<compile_context>
chip_gen: v5e
topology: v5e:2x2
jax: 0.10.0
libtpu: 0.0.40
codegen_flags: <defaults>
</compile_context>

<pallas_src>
import functools

import jax
import jax.numpy as jnp
from jax import lax
from jax.experimental import pallas as pl
from jax.experimental.pallas import tpu as pltpu

# Constants standing in for the (undefined) `par` module in the reference code.
SIG_THRESHOLD = 0.5   # par.SIG_THRESHOLD
RATIO_EO = 0.2        # par.RATIO_EO

_LANES = 128
_NSTAT = 9            # bce, f_tp, f_p, f_cnt, f_pos, m_tp, m_p, m_cnt, m_pos
_NUM_SLICES = 2       # leading "parallel" grid axis (both TCs on v7x)


def _round_up(x, m):
    return (x + m - 1) // m * m


def _make_kernel(chunk, n_chunks):
    sub = chunk // 8

    def kernel(pred_ref, code_ref, out_ref):
        @pl.when(pl.program_id(1) == 0)
        def _init():
            out_ref[...] = jnp.zeros_like(out_ref)

        def process(pred_blk, code_blk):
            # (chunk, 128) -> (chunk//8, 8, 128): layout-free sublane split so
            # every reduction below is a full-vreg VALU add (no XLU, no masks).
            pred = pred_blk.reshape(sub, 8, _LANES)
            code = code_blk.reshape(sub, 8, _LANES)

            # Decode code = sign(target) * (1 + gender_idx); padding = +1.
            tgt_pos = code > 0.0
            ac = jnp.abs(code)
            fem = (ac == 2.0).astype(jnp.float32)
            mal = (ac == 3.0).astype(jnp.float32)
            tgt = tgt_pos.astype(jnp.float32)
            pos_pred = (pred >= SIG_THRESHOLD).astype(jnp.float32)

            # Binary cross entropy with a single log (target strictly {0,1});
            # matches torch's clamp(log, min=-100) semantics.
            # TODO(synk): keep the two-term form if soft labels are ever possible.
            p_true = jnp.where(tgt_pos, pred, 1.0 - pred)
            bce = -jnp.maximum(jnp.log(p_true), -100.0)

            f_p = fem * pos_pred
            m_p = mal * pos_pred

            stats = (
                bce,          # 0: BCE partial sums
                f_p * tgt,    # 1: female TP
                f_p,          # 2: female predicted-positive
                fem,          # 3: female count
                fem * tgt,    # 4: female positive-label count
                m_p * tgt,    # 5: male TP
                m_p,          # 6: male predicted-positive
                mal,          # 7: male count
                mal * tgt,    # 8: male positive-label count
            )
            # Unmasked full-(8,128)-tile accumulates into the resident output.
            for k, s in enumerate(stats):
                out_ref[k * 8:(k + 1) * 8, :] += jnp.sum(s, axis=0)

        if n_chunks == 1:
            process(pred_ref[...], code_ref[...])
        else:
            def chunk_body(c, carry):
                off = pl.multiple_of(c * chunk, 8)
                process(pred_ref[pl.ds(off, chunk), :],
                        code_ref[pl.ds(off, chunk), :])
                return carry
            lax.fori_loop(0, n_chunks, chunk_body, 0)

    return kernel


@functools.partial(jax.jit, static_argnames=("max_block_rows", "chunk_rows"))
def _fairness_loss_pallas(label_pred, label_true, *, max_block_rows=4096,
                          chunk_rows=256):
    pred = label_pred.astype(jnp.float32).reshape(-1)
    true = label_true.astype(jnp.float32)
    n = pred.shape[0]

    # Exact one-hot match, mirroring torch.equal in the reference loop.
    target = true[:, 0]
    is_female = jnp.logical_and(true[:, 1] == 1.0, true[:, 2] == 0.0)
    is_male = jnp.logical_and(true[:, 1] == 0.0, true[:, 2] == 1.0)
    gender_idx = jnp.where(is_female, 1.0, 0.0) + jnp.where(is_male, 2.0, 0.0)
    # Single combined channel: sign carries the target, magnitude the gender.
    code = (1.0 + gender_idx) * (2.0 * target - 1.0)

    rows = -(-n // _LANES)
    block_rows = max(8, min(int(max_block_rows), _round_up(rows, 8)))
    chunk = _round_up(max(8, min(int(chunk_rows), block_rows)), 8)
    block_rows = _round_up(block_rows, chunk)
    rows_pad = _round_up(rows, _NUM_SLICES * block_rows)
    inner_steps = rows_pad // (_NUM_SLICES * block_rows)
    n_chunks = block_rows // chunk
    pad = rows_pad * _LANES - n

    # Neutral padding: pred=1, code=+1 (target=1, gender "other") -> zero BCE
    # and never counted in any confusion statistic.
    pred_slab = jnp.pad(pred, (0, pad), constant_values=1.0).reshape(rows_pad, _LANES)
    code_slab = jnp.pad(code, (0, pad), constant_values=1.0).reshape(rows_pad, _LANES)

    imap = lambda c, i: (c * inner_steps + i, 0)
    out = pl.pallas_call(
        _make_kernel(chunk, n_chunks),
        out_shape=jax.ShapeDtypeStruct((_NUM_SLICES * _NSTAT * 8, _LANES),
                                       jnp.float32),
        grid=(_NUM_SLICES, inner_steps),
        in_specs=[pl.BlockSpec((block_rows, _LANES), imap),
                  pl.BlockSpec((block_rows, _LANES), imap)],
        out_specs=pl.BlockSpec((_NSTAT * 8, _LANES), lambda c, i: (c, 0)),
        compiler_params=pltpu.CompilerParams(
            dimension_semantics=("parallel", "arbitrary")),
    )(pred_slab, code_slab)

    # Finalize: a handful of scalar ops -- cheaper in XLA than an in-kernel
    # cross-lane finalize, and required so each TC slice stays independent.
    totals = jnp.sum(out.reshape(_NUM_SLICES, _NSTAT, 8, _LANES), axis=(0, 2, 3))
    bce_sum = totals[0]
    f_tp, f_p, f_cnt, f_pos = totals[1], totals[2], totals[3], totals[4]
    m_tp, m_p, m_cnt, m_pos = totals[5], totals[6], totals[7], totals[8]

    def safe_div(a, b):
        d = jnp.where(b > 0.0, b, 1.0)
        return jnp.where(b > 0.0, a / d, 0.0)

    # TODO(synk): `Equalized_odds(tp, tn, fn, fp, Attr)` is undefined in the
    # reference source; standard equalized-odds gap used here.
    tpr_f = safe_div(f_tp, f_pos)                    # tp / (tp + fn)
    tpr_m = safe_div(m_tp, m_pos)
    fpr_f = safe_div(f_p - f_tp, f_cnt - f_pos)      # fp / (fp + tn)
    fpr_m = safe_div(m_p - m_tp, m_cnt - m_pos)
    eo = jnp.abs(tpr_f - tpr_m) + jnp.abs(fpr_f - fpr_m)

    ce = bce_sum / n
    loss = (1.0 - RATIO_EO) * ce + RATIO_EO * eo
    return loss, ce, eo


@jax.jit
def _fairness_loss_xla(label_pred, label_true):
    """Fused pure-JAX path (also the correctness reference)."""
    pred = label_pred.astype(jnp.float32)
    true = label_true.astype(jnp.float32)
    target = true[:, 0:1]
    bce = -(target * jnp.maximum(jnp.log(pred), -100.0)
            + (1.0 - target) * jnp.maximum(jnp.log(1.0 - pred), -100.0))
    ce = jnp.mean(bce)
    female = (true[:, 1:2] == 1.0) & (true[:, 2:3] == 0.0)
    male = (true[:, 1:2] == 0.0) & (true[:, 2:3] == 1.0)
    pp = pred >= SIG_THRESHOLD

    def grp(m):
        p = jnp.sum((m & pp).astype(jnp.float32))
        tp = jnp.sum((m & pp & (target == 1.0)).astype(jnp.float32))
        nn_ = jnp.sum((m & ~pp).astype(jnp.float32))
        tn = jnp.sum((m & ~pp & (target == 0.0)).astype(jnp.float32))
        return tp, tn, p - tp, nn_ - tn

    ftp, ftn, ffp, ffn = grp(female)
    mtp, mtn, mfp, mfn = grp(male)
    sd = lambda a, b: jnp.where(b > 0, a / jnp.where(b > 0, b, 1.0), 0.0)
    eo = jnp.abs(sd(ftp, ftp + ffn) - sd(mtp, mtp + mfn)) + \
         jnp.abs(sd(ffp, ffp + ftn) - sd(mfp, mfp + mtn))
    return (1.0 - RATIO_EO) * ce + RATIO_EO * eo, ce, eo


def fairness_loss(label_pred, label_true, *, max_block_rows=4096, chunk_rows=256,
                  min_pallas_samples=16384, force_pallas=False):
    """Returns (Loss_fair, [CE_loss, EO_regularization]) like the torch module."""
    n = int(label_pred.shape[0])
    if not force_pallas and n < int(min_pallas_samples):
        # Tiny batches: XLA fusion beats the pallas_call + pack round trip.
        loss, ce, eo = _fairness_loss_xla(label_pred, label_true)
        return loss, [ce, eo]
    loss, ce, eo = _fairness_loss_pallas(
        label_pred, label_true,
        max_block_rows=int(max_block_rows), chunk_rows=int(chunk_rows))
    return loss, [ce, eo]


if __name__ == "__main__":
    def make_inputs(key, n):
        k1, k2, k3 = jax.random.split(key, 3)
        label_pred = jax.nn.sigmoid(jax.random.normal(k1, (n, 1), dtype=jnp.float32))
        true_label = jax.random.bernoulli(k2, 0.5, (n, 1)).astype(jnp.float32)
        is_female = jax.random.bernoulli(k3, 0.5, (n, 1)).astype(jnp.float32)
        gender_onehot = jnp.concatenate([is_female, 1.0 - is_female], axis=1)
        label_true = jnp.concatenate([true_label, gender_onehot], axis=1)
        return label_pred, label_true

    def check_pallas(lp, lt, **kw):
        loss, (ce, eo) = fairness_loss(lp, lt, force_pallas=True, **kw)
        jax.block_until_ready(loss)
        r_loss, r_ce, r_eo = _fairness_loss_xla(lp, lt)
        assert abs(float(loss) - float(r_loss)) < 1e-4, (loss, r_loss)
        assert abs(float(ce) - float(r_ce)) < 1e-4, (ce, r_ce)
        assert abs(float(eo) - float(r_eo)) < 1e-4, (eo, r_eo)

    # Small case (matches the module's typical usage scale): grid (2, 1).
    lp, lt = make_inputs(jax.random.PRNGKey(0), 8)
    check_pallas(lp, lt)

    # Larger case, default tiling (single block per slice, padded tail).
    lp2, lt2 = make_inputs(jax.random.PRNGKey(1), 3000)
    check_pallas(lp2, lt2)

    # Multi grid-step case: exercises init/accumulate across the "arbitrary"
    # axis and both parallel slices (grid (2, 2)).
    check_pallas(lp2, lt2, max_block_rows=8, chunk_rows=8)

    # Multi-chunk inner loop within one block (3 chunks per block).
    check_pallas(lp2, lt2, max_block_rows=32, chunk_rows=8)

    # Auto-dispatch path (small N -> fused pure-JAX reduction).
    loss_auto, _ = fairness_loss(lp, lt)
    jax.block_until_ready(loss_auto)

    print("KERNEL_OK")
</pallas_src>

<mosaic_0001>
module attributes {stable_mosaic.version = 11 : i64} {
  func.func @kernel(%arg0: i32, %arg1: i32, %arg2: memref<8x128xf32, #tpu.memory_space<vmem>>, %arg3: memref<8x128xf32, #tpu.memory_space<vmem>>, %arg4: memref<72x128xf32, #tpu.memory_space<vmem>>) attributes {dimension_semantics = [#tpu.dimension_semantics<parallel>, #tpu.dimension_semantics<arbitrary>], iteration_bounds = array<i64: 2, 1>, scalar_prefetch = 0 : i64, scratch_operands = 0 : i64, tpu.core_type = #tpu.core_type<tc>, window_params = [{transform_indices = @transform_0, window_bounds = array<i64: 8, 128>}, {transform_indices = @transform_1, window_bounds = array<i64: 8, 128>}, {transform_indices = @transform_2, window_bounds = array<i64: 72, 128>}]} {
    %c0_i32 = arith.constant 0 : i32
    %0 = arith.cmpi eq, %arg1, %c0_i32 : i32
    %1 = arith.extui %0 : i1 to i32
    %c0_i32_0 = arith.constant 0 : i32
    %2 = arith.cmpi ne, %1, %c0_i32_0 : i32
    scf.if %2 {
      %cst_47 = arith.constant 0.000000e+00 : f32
      %74 = vector.broadcast %cst_47 : f32 to vector<72x128xf32>
      %c0_48 = arith.constant 0 : index
      %c0_49 = arith.constant 0 : index
      %75 = vector.load %arg4[%c0_48, %c0_49] : memref<72x128xf32, #tpu.memory_space<vmem>>, vector<72x128xf32>
      tpu.vector_store %arg4[%c0_48, %c0_49], %74 {strides = array<i32>} : memref<72x128xf32, #tpu.memory_space<vmem>>, vector<72x128xf32>,
    } else {
    }
    %c0 = arith.constant 0 : index
    %c0_1 = arith.constant 0 : index
    %3 = vector.load %arg2[%c0, %c0_1] : memref<8x128xf32, #tpu.memory_space<vmem>>, vector<8x128xf32>
    %c0_2 = arith.constant 0 : index
    %c0_3 = arith.constant 0 : index
    %4 = vector.load %arg3[%c0_2, %c0_3] : memref<8x128xf32, #tpu.memory_space<vmem>>, vector<8x128xf32>
    %5 = vector.shape_cast %3 : vector<8x128xf32> to vector<1x8x128xf32>
    %6 = vector.shape_cast %4 : vector<8x128xf32> to vector<1x8x128xf32>
    %cst = arith.constant 0.000000e+00 : f32
    %7 = vector.broadcast %cst : f32 to vector<1x8x128xf32>
    %8 = arith.cmpf ogt, %6, %7 : vector<1x8x128xf32>
    %9 = math.absf %6 : vector<1x8x128xf32>
    %cst_4 = arith.constant 2.000000e+00 : f32
    %10 = vector.broadcast %cst_4 : f32 to vector<1x8x128xf32>
    %11 = arith.cmpf oeq, %9, %10 : vector<1x8x128xf32>
    %12 = arith.extui %11 : vector<1x8x128xi1> to vector<1x8x128xi32>
    %13 = arith.sitofp %12 : vector<1x8x128xi32> to vector<1x8x128xf32>
    %cst_5 = arith.constant 3.000000e+00 : f32
    %14 = vector.broadcast %cst_5 : f32 to vector<1x8x128xf32>
    %15 = arith.cmpf oeq, %9, %14 : vector<1x8x128xf32>
    %16 = arith.extui %15 : vector<1x8x128xi1> to vector<1x8x128xi32>
    %17 = arith.sitofp %16 : vector<1x8x128xi32> to vector<1x8x128xf32>
    %18 = arith.extui %8 : vector<1x8x128xi1> to vector<1x8x128xi32>
    %19 = arith.sitofp %18 : vector<1x8x128xi32> to vector<1x8x128xf32>
    %cst_6 = arith.constant 5.000000e-01 : f32
    %20 = vector.broadcast %cst_6 : f32 to vector<1x8x128xf32>
    %21 = arith.cmpf oge, %5, %20 : vector<1x8x128xf32>
    %22 = arith.extui %21 : vector<1x8x128xi1> to vector<1x8x128xi32>
    %23 = arith.sitofp %22 : vector<1x8x128xi32> to vector<1x8x128xf32>
    %cst_7 = arith.constant 1.000000e+00 : f32
    %24 = vector.broadcast %cst_7 : f32 to vector<1x8x128xf32>
    %25 = arith.subf %24, %5 : vector<1x8x128xf32>
    %26 = arith.select %8, %5, %25 : vector<1x8x128xi1>, vector<1x8x128xf32>
    %27 = math.log %26 : vector<1x8x128xf32>
    %cst_8 = arith.constant -1.000000e+02 : f32
    %28 = vector.broadcast %cst_8 : f32 to vector<1x8x128xf32>
    %29 = arith.maximumf %27, %28 : vector<1x8x128xf32>
    %cst_9 = arith.constant 0.000000e+00 : f32
    %30 = vector.broadcast %cst_9 : f32 to vector<1x8x128xf32>
    %31 = arith.subf %30, %29 : vector<1x8x128xf32>
    %32 = arith.mulf %13, %23 : vector<1x8x128xf32>
    %33 = arith.mulf %17, %23 : vector<1x8x128xf32>
    %34 = arith.mulf %32, %19 : vector<1x8x128xf32>
    %35 = arith.mulf %13, %19 : vector<1x8x128xf32>
    %36 = arith.mulf %33, %19 : vector<1x8x128xf32>
    %37 = arith.mulf %17, %19 : vector<1x8x128xf32>
    %c0_10 = arith.constant 0 : index
    %c0_11 = arith.constant 0 : index
    %38 = vector.load %arg4[%c0_10, %c0_11] : memref<72x128xf32, #tpu.memory_space<vmem>>, vector<8x128xf32>
    %cst_12 = arith.constant dense<0.000000e+00> : vector<8x128xf32>
    %39 = vector.multi_reduction <add>, %31, %cst_12 [0] : vector<1x8x128xf32> to vector<8x128xf32>
    %40 = arith.addf %38, %39 : vector<8x128xf32>
    %c0_13 = arith.constant 0 : index
    %c0_14 = arith.constant 0 : index
    %41 = vector.load %arg4[%c0_13, %c0_14] : memref<72x128xf32, #tpu.memory_space<vmem>>, vector<8x128xf32>
    tpu.vector_store %arg4[%c0_13, %c0_14], %40 {strides = array<i32>} : memref<72x128xf32, #tpu.memory_space<vmem>>, vector<8x128xf32>,
    %c8 = arith.constant 8 : index
    %c0_15 = arith.constant 0 : index
    %42 = vector.load %arg4[%c8, %c0_15] : memref<72x128xf32, #tpu.memory_space<vmem>>, vector<8x128xf32>
    %cst_16 = arith.constant dense<0.000000e+00> : vector<8x128xf32>
    %43 = vector.multi_reduction <add>, %34, %cst_16 [0] : vector<1x8x128xf32> to vector<8x128xf32>
    %44 = arith.addf %42, %43 : vector<8x128xf32>
    %c8_17 = arith.constant 8 : index
    %c0_18 = arith.constant 0 : index
    %45 = vector.load %arg4[%c8_17, %c0_18] : memref<72x128xf32, #tpu.memory_space<vmem>>, vector<8x128xf32>
    tpu.vector_store %arg4[%c8_17, %c0_18], %44 {strides = array<i32>} : memref<72x128xf32, #tpu.memory_space<vmem>>, vector<8x128xf32>,
    %c16 = arith.constant 16 : index
    %c0_19 = arith.constant 0 : index
    %46 = vector.load %arg4[%c16, %c0_19] : memref<72x128xf32, #tpu.memory_space<vmem>>, vector<8x128xf32>
    %cst_20 = arith.constant dense<0.000000e+00> : vector<8x128xf32>
    %47 = vector.multi_reduction <add>, %32, %cst_20 [0] : vector<1x8x128xf32> to vector<8x128xf32>
    %48 = arith.addf %46, %47 : vector<8x128xf32>
    %c16_21 = arith.constant 16 : index
    %c0_22 = arith.constant 0 : index
    %49 = vector.load %arg4[%c16_21, %c0_22] : memref<72x128xf32, #tpu.memory_space<vmem>>, vector<8x128xf32>
    tpu.vector_store %arg4[%c16_21, %c0_22], %48 {strides = array<i32>} : memref<72x128xf32, #tpu.memory_space<vmem>>, vector<8x128xf32>,
    %c24 = arith.constant 24 : index
    %c0_23 = arith.constant 0 : index
    %50 = vector.load %arg4[%c24, %c0_23] : memref<72x128xf32, #tpu.memory_space<vmem>>, vector<8x128xf32>
    %cst_24 = arith.constant dense<0.000000e+00> : vector<8x128xf32>
    %51 = vector.multi_reduction <add>, %13, %cst_24 [0] : vector<1x8x128xf32> to vector<8x128xf32>
    %52 = arith.addf %50, %51 : vector<8x128xf32>
    %c24_25 = arith.constant 24 : index
    %c0_26 = arith.constant 0 : index
    %53 = vector.load %arg4[%c24_25, %c0_26] : memref<72x128xf32, #tpu.memory_space<vmem>>, vector<8x128xf32>
    tpu.vector_store %arg4[%c24_25, %c0_26], %52 {strides = array<i32>} : memref<72x128xf32, #tpu.memory_space<vmem>>, vector<8x128xf32>,
    %c32 = arith.constant 32 : index
    %c0_27 = arith.constant 0 : index
    %54 = vector.load %arg4[%c32, %c0_27] : memref<72x128xf32, #tpu.memory_space<vmem>>, vector<8x128xf32>
    %cst_28 = arith.constant dense<0.000000e+00> : vector<8x128xf32>
    %55 = vector.multi_reduction <add>, %35, %cst_28 [0] : vector<1x8x128xf32> to vector<8x128xf32>
    %56 = arith.addf %54, %55 : vector<8x128xf32>
    %c32_29 = arith.constant 32 : index
    %c0_30 = arith.constant 0 : index
    %57 = vector.load %arg4[%c32_29, %c0_30] : memref<72x128xf32, #tpu.memory_space<vmem>>, vector<8x128xf32>
    tpu.vector_store %arg4[%c32_29, %c0_30], %56 {strides = array<i32>} : memref<72x128xf32, #tpu.memory_space<vmem>>, vector<8x128xf32>,
    %c40 = arith.constant 40 : index
    %c0_31 = arith.constant 0 : index
    %58 = vector.load %arg4[%c40, %c0_31] : memref<72x128xf32, #tpu.memory_space<vmem>>, vector<8x128xf32>
    %cst_32 = arith.constant dense<0.000000e+00> : vector<8x128xf32>
    %59 = vector.multi_reduction <add>, %36, %cst_32 [0] : vector<1x8x128xf32> to vector<8x128xf32>
    %60 = arith.addf %58, %59 : vector<8x128xf32>
    %c40_33 = arith.constant 40 : index
    %c0_34 = arith.constant 0 : index
    %61 = vector.load %arg4[%c40_33, %c0_34] : memref<72x128xf32, #tpu.memory_space<vmem>>, vector<8x128xf32>
    tpu.vector_store %arg4[%c40_33, %c0_34], %60 {strides = array<i32>} : memref<72x128xf32, #tpu.memory_space<vmem>>, vector<8x128xf32>,
    %c48 = arith.constant 48 : index
    %c0_35 = arith.constant 0 : index
    %62 = vector.load %arg4[%c48, %c0_35] : memref<72x128xf32, #tpu.memory_space<vmem>>, vector<8x128xf32>
    %cst_36 = arith.constant dense<0.000000e+00> : vector<8x128xf32>
    %63 = vector.multi_reduction <add>, %33, %cst_36 [0] : vector<1x8x128xf32> to vector<8x128xf32>
    %64 = arith.addf %62, %63 : vector<8x128xf32>
    %c48_37 = arith.constant 48 : index
    %c0_38 = arith.constant 0 : index
    %65 = vector.load %arg4[%c48_37, %c0_38] : memref<72x128xf32, #tpu.memory_space<vmem>>, vector<8x128xf32>
    tpu.vector_store %arg4[%c48_37, %c0_38], %64 {strides = array<i32>} : memref<72x128xf32, #tpu.memory_space<vmem>>, vector<8x128xf32>,
    %c56 = arith.constant 56 : index
    %c0_39 = arith.constant 0 : index
    %66 = vector.load %arg4[%c56, %c0_39] : memref<72x128xf32, #tpu.memory_space<vmem>>, vector<8x128xf32>
    %cst_40 = arith.constant dense<0.000000e+00> : vector<8x128xf32>
    %67 = vector.multi_reduction <add>, %17, %cst_40 [0] : vector<1x8x128xf32> to vector<8x128xf32>
    %68 = arith.addf %66, %67 : vector<8x128xf32>
    %c56_41 = arith.constant 56 : index
    %c0_42 = arith.constant 0 : index
    %69 = vector.load %arg4[%c56_41, %c0_42] : memref<72x128xf32, #tpu.memory_space<vmem>>, vector<8x128xf32>
    tpu.vector_store %arg4[%c56_41, %c0_42], %68 {strides = array<i32>} : memref<72x128xf32, #tpu.memory_space<vmem>>, vector<8x128xf32>,
    %c64 = arith.constant 64 : index
    %c0_43 = arith.constant 0 : index
    %70 = vector.load %arg4[%c64, %c0_43] : memref<72x128xf32, #tpu.memory_space<vmem>>, vector<8x128xf32>
    %cst_44 = arith.constant dense<0.000000e+00> : vector<8x128xf32>
    %71 = vector.multi_reduction <add>, %37, %cst_44 [0] : vector<1x8x128xf32> to vector<8x128xf32>
    %72 = arith.addf %70, %71 : vector<8x128xf32>
    %c64_45 = arith.constant 64 : index
    %c0_46 = arith.constant 0 : index
    %73 = vector.load %arg4[%c64_45, %c0_46] : memref<72x128xf32, #tpu.memory_space<vmem>>, vector<8x128xf32>
    tpu.vector_store %arg4[%c64_45, %c0_46], %72 {strides = array<i32>} : memref<72x128xf32, #tpu.memory_space<vmem>>, vector<8x128xf32>,
    return
  }
  func.func @transform_0(%arg0: i32, %arg1: i32) -> (i32, i32) {
    %c1_i32 = arith.constant 1 : i32
    %0 = arith.muli %arg0, %c1_i32 : i32
    %1 = arith.addi %0, %arg1 : i32
    %c0_i32 = arith.constant 0 : i32
    %c0_i32_0 = arith.constant 0 : i32
    return %1, %c0_i32 : i32, i32
  }
  func.func @transform_1(%arg0: i32, %arg1: i32) -> (i32, i32) {
    %c1_i32 = arith.constant 1 : i32
    %0 = arith.muli %arg0, %c1_i32 : i32
    %1 = arith.addi %0, %arg1 : i32
    %c0_i32 = arith.constant 0 : i32
    %c0_i32_0 = arith.constant 0 : i32
    return %1, %c0_i32 : i32, i32
  }
  func.func @transform_2(%arg0: i32, %arg1: i32) -> (i32, i32) {
    %c0_i32 = arith.constant 0 : i32
    %c0_i32_0 = arith.constant 0 : i32
    return %arg0, %c0_i32 : i32, i32
  }
}

</mosaic_0001>

<bundles_post_ra>
// kernel: _fairness_loss_pallas.1
= control target key start
LH: loop header
LB: loop body
LE: loop exit
PB: predicated region body
PF: predicated region fallthrough
CT: control target
= control target key end

     0   :  { %s419_s9 = smov 0   ;;  %s421_s10 = smov 0   ;;  %s455_s0 = inlined_call_operand.vmem [shape: f32[16,128], index: 0, kind: input, shape index: {}]   ;;  %s456_s1 = inlined_call_operand.vmem [shape: f32[16,128], index: 1, kind: input, shape index: {}]   ;;  %s457_s2 = inlined_call_operand.vmem [shape: f32[144,128], index: 2, kind: output, shape index: {}]  }
   0x1   :  { %s423_s11 = smov 0  }
   0x2 LB: > { %s24_s12 = sadd.s32 1, %s397_s10  ;;  %p342_p0 = scmp.ge.s32.totalorder %s401_s11, 1  ;;  %s401_s11 = sphi %s423_s11, %s12_s11   ;;  %s397_s10 = sphi %s421_s10, %s459_s10   ;;  %s393_s9 = sphi %s419_s9, %s458_s9  }
   0x3   : > { %p26_p1 = scmp.ge.s32.totalorder %s24_s12, 2  ;;  %p140_p2 = scmp.lt.s32.totalorder %s401_s11, 3 }
   0x5   : > { %s461_s12 = smov (%p26_p1, %s24_s12), 0  ;;  %p141_p3 = pnand %p342_p0, %p140_p2 }
   0x6   : > { %s179_s13 = smul.u32 (!%p141_p3), 9, %s393_s9  ;;  %p168_p4 = scmp.lt.s32.totalorder (!%p141_p3), %s393_s9, 1 }
   0x7   : > { %144 = sbr.rel (%p141_p3) target bundleno = 33 (0x21), region = 28 }
   0x8   : > { %p180_p5 = scmp.lt.s32.totalorder (!%p141_p3), %s179_s13, 17 }
   0xc   : > { %s463_s9 = smov (!%p168_p4, %s393_s9), 1  ;;  %s465_s13 = smov (!%p180_p5, %s179_s13), 17  ;;  %v403_v5 = vmov 0.0  }
   0xd   : > { %s343_s14 = sshll.u32 %s463_s9, 3  ;;  %s345_s21 = sshll.u32 %s465_s13, 3 }
   0xe   : > { %s171_s17 = scalar_lea.vmem %s455_s0, %s343_s14  ;;  %s177_s20 = scalar_lea.vmem %s456_s1, %s343_s14 }
   0xf   : > { %v198_v0 = vld [vmem:[%s171_s17] sm:$0xff]  ;;  %s183_s24 = scalar_lea.vmem %s457_s2, %s345_s21 }
  0x10   : > { %v199_v1 = vld [vmem:[%s177_s20] sm:$0xff]  ;;  %v213_v2 = vsub.f32 1.0, %v198_v0  ;;  %vm210_vm0 = vcmp.ge.f32.partialorder %v198_v0, 0.5 }
  0x11   : > { %vm200_vm1 = vcmp.gt.f32.partialorder %v199_v1, 0.0  ;;  %v201_v3 = vand.u32 2147483647, %v199_v1  ;;  %v349_v7 = vsel %vm210_vm0, 1.0, %v403_v5 }
  0x12   : > { %v214_v4 = vsel %vm200_vm1, %v198_v0, %v213_v2  ;;  %v348_v6 = vsel %vm200_vm1, 1.0, %v403_v5 }
  0x13   : > { %377 = vlog2.f32 %v214_v4  ;;  %vm202_vm2 = vcmp.eq.f32.partialorder %v201_v3, 2.0  ;;  %vm205_vm3 = vcmp.eq.f32.partialorder %v201_v3, 3.0 }
  0x14   : > { %v346_v8 = vsel %vm202_vm2, 1.0, %v403_v5  ;;  %v347_v9 = vsel %vm205_vm3, 1.0, %v403_v5 }
  0x15   : > { %v219_v10 = vmul.f32 %v349_v7, %v346_v8  ;;  %v222_v11 = vmul.f32 %v348_v6, %v346_v8  ;;  %v220_v12 = vmul.f32 %v349_v7, %v347_v9  ;;  %v224_v13 = vmul.f32 %v348_v6, %v347_v9  ;;  %240 = vst [vmem:[%s183_s24 + $0x18] sm:$0xff] %v346_v8 }
  0x16   : > { %256 = vst [vmem:[%s183_s24 + $0x38] sm:$0xff] %v347_v9 }
  0x17   : > { %v221_v14 = vmul.f32 %v348_v6, %v219_v10  ;;  %v223_v15 = vmul.f32 %v348_v6, %v220_v12  ;;  %236 = vst [vmem:[%s183_s24 + $0x10] sm:$0xff] %v219_v10 }
  0x18   : > { %244 = vst [vmem:[%s183_s24 + $0x20] sm:$0xff] %v222_v11 }
  0x19   : > { %v378_v16 = vpop.eup %377  ;;  %232 = vst [vmem:[%s183_s24 + $0x8] sm:$0xff] %v221_v14 }
  0x1a   : > { %v216_v17 = vmul.f32 0.6931472, %v378_v16  ;;  %248 = vst [vmem:[%s183_s24 + $0x28] sm:$0xff] %v223_v15 }
  0x1b   : > { %252 = vst [vmem:[%s183_s24 + $0x30] sm:$0xff] %v220_v12 }
  0x1c   : > { %v217_v18 = vmax.f32 %v216_v17, -100.0  ;;  %260 = vst [vmem:[%s183_s24 + $0x40] sm:$0xff] %v224_v13 }
  0x1e   : > { %v218_v19 = vsub.f32 0.0, %v217_v18 }
  0x20   : > { %228 = vst [vmem:[%s183_s24] sm:$0xff] %v218_v19 }
  0x21 PF: > { %s12_s11 = sadd.s32 1, %s401_s11   ;;  %s458_s9 = smov %s397_s10 }
  0x22   : > { %p9_p6 = scmp.ge.s32.totalorder %s12_s11, 4   ;;  %s459_s10 = smov %s461_s12 }
  0x24   :  { %11 = sbr.rel (!%p9_p6) target bundleno = 2 (0x2), region = 65 }

</bundles_post_ra>
